<compile_context>
chip_gen: v5e
topology: v5e:2x2
jax: 0.10.0
libtpu: 0.0.40
codegen_flags: <defaults>
</compile_context>

<pallas_src>
import functools

import jax
import jax.numpy as jnp
from jax.experimental import pallas as pl
from jax.experimental.pallas import tpu as pltpu


# ----------------------------- configuration ---------------------------------
ENCODER_DICTS = [
    {"name": "tok", "num_embeddings": 32, "embedding_dim": 16},
    {"name": "pos", "num_embeddings": 8,  "embedding_dim": 16},
    {"name": "typ", "num_embeddings": 4,  "embedding_dim": 16},
]
SENTENCE_STRUCTURE = ["tok", "pos", "tok", "typ"]     # L = 4 positions
EMBEDDING_DIM = ENCODER_DICTS[0]["embedding_dim"]     # 16
TOTAL_DIM = EMBEDDING_DIM * len(SENTENCE_STRUCTURE)   # 64
BATCH = 8


def _round_up(x, m):
    return ((x + m - 1) // m) * m


# ------------------------------- the kernel ----------------------------------
def _sentence_encoder_kernel(offsets, ids_ref, fused_t_ref, b_ref, out_ref):
    """Fused (lookup + concat + Linear) as one lane-dense multi-hot matmul per tile.

    ids_ref:     (L, TB)        int32 token ids (batch on the lane axis)
    fused_t_ref: (D_out, V_pad) f32   pre-fused (embedding @ W-block) table, transposed
    b_ref:       (D_out, 1)     f32   bias
    out_ref:     (D_out, TB)    bf16  (batch on the lane axis)
    """
    v_pad = fused_t_ref.shape[1]
    tb = ids_ref.shape[1]
    ids = ids_ref[...]                                             # (L, TB) int32

    # Single iota reused for all positions (JAX does not CSE broadcast_in_dim).
    iota = jax.lax.broadcasted_iota(jnp.int32, (v_pad, tb), 0)     # (V_pad, TB)

    # Multi-hot selection mask: exactly one 1 per position, in disjoint row blocks.
    hit = iota == (ids[0:1, :] + offsets[0])
    for n in range(1, len(offsets)):
        hit = jnp.logical_or(hit, iota == (ids[n:n + 1, :] + offsets[n]))
    sel = hit.astype(jnp.float32)                                  # (V_pad, TB)

    # One MXU pass, N = TB fully fed: gather-and-sum of fused rows == concat(emb) @ W_T.
    acc = jnp.dot(fused_t_ref[...], sel, preferred_element_type=jnp.float32)
    out_ref[...] = (acc + b_ref[...]).astype(out_ref.dtype)        # f32 bias add


# ------------------------------- the wrapper ----------------------------------
def sentence_encoder(x_ids, tables, w, b,
                     structure=SENTENCE_STRUCTURE,
                     table_names=None,
                     block_b=4096):
    """x_ids: (B, L) int ids.  tables: list of (V_i, D) f32.  w: (D_out, total_dim) f32
    (torch Linear layout).  b: (D_out,) f32.  Returns (B, D_out) bfloat16."""
    if table_names is None:
        table_names = [e["name"] for e in ENCODER_DICTS]
    name_to_idx = {n: i for i, n in enumerate(table_names)}

    d = tables[0].shape[1]
    d_out = w.shape[0]
    B, L = x_ids.shape
    assert L == len(structure)

    # ---- parameter preprocessing (wrapper side, once per parameter set) ----
    # W pre-transposed + pre-cast to bf16; embedding tables pre-cast to bf16 (mirrors the
    # torch `.to(torch.float16)` on the gathered features).  The fused per-position
    # (table @ W_block) products are accumulated and KEPT in f32 so no partial dot
    # products are rounded to bf16 (matches the reference path).
    w_t = jnp.transpose(w).astype(jnp.bfloat16)                    # (total_dim, D_out)
    blocks, offsets, off = [], [], 0
    for n, name in enumerate(structure):
        t = tables[name_to_idx[name]].astype(jnp.bfloat16)         # (V_n, D) bf16
        w_blk = w_t[n * d:(n + 1) * d, :]                          # (D, D_out) bf16
        blocks.append(jnp.dot(t, w_blk, preferred_element_type=jnp.float32))
        offsets.append(off)
        off += t.shape[0]
    fused = jnp.concatenate(blocks, axis=0)                        # (sum_V, D_out) f32
    v_pad = _round_up(off, 8)                                      # sublane/K axis: 76 -> 80
    fused = jnp.pad(fused, ((0, v_pad - off), (0, 0)))
    fused_t = jnp.transpose(fused)                                 # (D_out, V_pad) f32
    bias2 = b.reshape(d_out, 1).astype(jnp.float32)

    # ---- batch tiling: batch on the 128-lane axis, >= 2 grid steps when possible ----
    n_lane_tiles = -(-B // 128)                                    # ceil(B / 128)
    if n_lane_tiles >= 2:
        # cap the tile so v7x's two TensorCores each get grid steps ("parallel" axis)
        tiles_per_step = max(1, min(max(block_b, 128) // 128, n_lane_tiles // 2))
    else:
        tiles_per_step = 1
    tb = tiles_per_step * 128                                      # lane-dense tile width
    b_pad = _round_up(B, tb)

    ids_t = jnp.transpose(x_ids.astype(jnp.int32))                 # (L, B)
    if b_pad != B:
        ids_t = jnp.pad(ids_t, ((0, 0), (0, b_pad - B)))           # id 0 is always valid

    kernel = functools.partial(_sentence_encoder_kernel, tuple(offsets))
    out_t = pl.pallas_call(
        kernel,
        out_shape=jax.ShapeDtypeStruct((d_out, b_pad), jnp.bfloat16),
        grid=(b_pad // tb,),
        in_specs=[
            pl.BlockSpec((L, tb), lambda i: (0, i)),               # ids tile (lane-dense)
            pl.BlockSpec((d_out, v_pad), lambda i: (0, 0)),        # fused table (replicated)
            pl.BlockSpec((d_out, 1), lambda i: (0, 0)),            # bias (replicated)
        ],
        out_specs=pl.BlockSpec((d_out, tb), lambda i: (0, i)),     # lane-dense output tile
        compiler_params=pltpu.CompilerParams(
            dimension_semantics=("parallel",)),                    # megacore on v7x
    )(ids_t, fused_t, bias2)
    return jnp.transpose(out_t[:, :B])                             # (B, D_out) bf16


# ---------------------------- pure-JAX reference -------------------------------
def sentence_encoder_ref(x_ids, tables, w, b,
                         structure=SENTENCE_STRUCTURE,
                         table_names=None):
    if table_names is None:
        table_names = [e["name"] for e in ENCODER_DICTS]
    name_to_idx = {n: i for i, n in enumerate(table_names)}
    pieces = []
    for n, name in enumerate(structure):
        t = tables[name_to_idx[name]]
        pieces.append(t[x_ids[:, n]])
    # torch: cast features to fp16 (-> bf16 here), Linear with bf16 weights, f32 accum.
    feat = jnp.concatenate(pieces, axis=-1).astype(jnp.bfloat16).astype(jnp.float32)
    w_bf = w.astype(jnp.bfloat16).astype(jnp.float32)
    out = feat @ w_bf.T + b
    return out.astype(jnp.bfloat16)


# ----------------------------------- main --------------------------------------
def _make_inputs(key, batch):
    k_ids, k_w, k_b, *k_tabs = jax.random.split(key, 4 + len(ENCODER_DICTS))
    tables = []
    for enc, kt in zip(ENCODER_DICTS, k_tabs):
        tables.append(jax.random.normal(
            kt, (enc["num_embeddings"], enc["embedding_dim"]), dtype=jnp.float32) * 0.05)
    w = jax.random.normal(k_w, (EMBEDDING_DIM, TOTAL_DIM), dtype=jnp.float32) * 0.05
    b = jax.random.normal(k_b, (EMBEDDING_DIM,), dtype=jnp.float32) * 0.05
    cols = []
    for n, name in enumerate(SENTENCE_STRUCTURE):
        vocab = next(e["num_embeddings"] for e in ENCODER_DICTS if e["name"] == name)
        kc = jax.random.fold_in(k_ids, n)
        cols.append(jax.random.randint(kc, (batch, 1), 0, vocab, dtype=jnp.int32))
    x_ids = jnp.concatenate(cols, axis=1)                          # (B, L) int32
    return x_ids, tables, w, b


def _check(x_ids, tables, w, b, **kw):
    out = jax.block_until_ready(sentence_encoder(x_ids, tables, w, b, **kw))
    ref = sentence_encoder_ref(x_ids, tables, w, b)
    assert out.shape == ref.shape, (out.shape, ref.shape)
    assert out.dtype == jnp.bfloat16, out.dtype
    assert jnp.allclose(out.astype(jnp.float32), ref.astype(jnp.float32),
                        atol=2e-2, rtol=2e-2), "mismatch vs reference"


if __name__ == "__main__":
    key = jax.random.PRNGKey(0)

    # small demo shape (B=8), single grid step (tb=128)
    x_ids, tables, w, b = _make_inputs(key, BATCH)
    _check(x_ids, tables, w, b)

    # exercise the multi-step batch grid + padding path (B=300 -> tb=128, 3 grid steps)
    x_ids2, tables2, w2, b2 = _make_inputs(jax.random.PRNGKey(1), 300)
    _check(x_ids2, tables2, w2, b2, block_b=128)

    # exercise the >=2-step cap at default block_b (B=1024 -> tb=512, 2 grid steps)
    x_ids3, tables3, w3, b3 = _make_inputs(jax.random.PRNGKey(2), 1024)
    _check(x_ids3, tables3, w3, b3)

    print("KERNEL_OK")
</pallas_src>

<mosaic_0001>
module attributes {stable_mosaic.version = 11 : i64} {
  func.func @_sentence_encoder_kernel(%arg0: i32, %arg1: memref<4x128xi32, #tpu.memory_space<vmem>>, %arg2: memref<16x80xf32, #tpu.memory_space<vmem>>, %arg3: memref<16x1xf32, #tpu.memory_space<vmem>>, %arg4: memref<16x128xbf16, #tpu.memory_space<vmem>>) attributes {dimension_semantics = [#tpu.dimension_semantics<parallel>], iteration_bounds = array<i64: 1>, scalar_prefetch = 0 : i64, scratch_operands = 0 : i64, tpu.core_type = #tpu.core_type<tc>, window_params = [{transform_indices = @transform_0, window_bounds = array<i64: 4, 128>}, {pipeline_mode = #tpu.pipeline_mode<synchronous>, transform_indices = @transform_1, window_bounds = array<i64: 16, 80>}, {pipeline_mode = #tpu.pipeline_mode<synchronous>, transform_indices = @transform_2, window_bounds = array<i64: 16, 1>}, {transform_indices = @transform_3, window_bounds = array<i64: 16, 128>}]} {
    %c0 = arith.constant 0 : index
    %c0_0 = arith.constant 0 : index
    %0 = vector.load %arg1[%c0, %c0_0] : memref<4x128xi32, #tpu.memory_space<vmem>>, vector<4x128xi32>
    %1 = tpu.iota {dimensions = array<i32: 0>} : vector<80x128xi32>
    %2 = vector.extract_strided_slice %0 {offsets = [0, 0], sizes = [1, 128], strides = [1, 1]} : vector<4x128xi32> to vector<1x128xi32>
    %c0_i32 = arith.constant 0 : i32
    %3 = vector.broadcast %c0_i32 : i32 to vector<1x128xi32>
    %4 = arith.addi %2, %3 : vector<1x128xi32>
    %5 = vector.broadcast %4 : vector<1x128xi32> to vector<80x128xi32>
    %6 = arith.cmpi eq, %1, %5 : vector<80x128xi32>
    %7 = vector.extract_strided_slice %0 {offsets = [1, 0], sizes = [1, 128], strides = [1, 1]} : vector<4x128xi32> to vector<1x128xi32>
    %c32_i32 = arith.constant 32 : i32
    %8 = vector.broadcast %c32_i32 : i32 to vector<1x128xi32>
    %9 = arith.addi %7, %8 : vector<1x128xi32>
    %10 = vector.broadcast %9 : vector<1x128xi32> to vector<80x128xi32>
    %11 = arith.cmpi eq, %1, %10 : vector<80x128xi32>
    %12 = arith.ori %6, %11 : vector<80x128xi1>
    %13 = vector.extract_strided_slice %0 {offsets = [2, 0], sizes = [1, 128], strides = [1, 1]} : vector<4x128xi32> to vector<1x128xi32>
    %c40_i32 = arith.constant 40 : i32
    %14 = vector.broadcast %c40_i32 : i32 to vector<1x128xi32>
    %15 = arith.addi %13, %14 : vector<1x128xi32>
    %16 = vector.broadcast %15 : vector<1x128xi32> to vector<80x128xi32>
    %17 = arith.cmpi eq, %1, %16 : vector<80x128xi32>
    %18 = arith.ori %12, %17 : vector<80x128xi1>
    %19 = vector.extract_strided_slice %0 {offsets = [3, 0], sizes = [1, 128], strides = [1, 1]} : vector<4x128xi32> to vector<1x128xi32>
    %c72_i32 = arith.constant 72 : i32
    %20 = vector.broadcast %c72_i32 : i32 to vector<1x128xi32>
    %21 = arith.addi %19, %20 : vector<1x128xi32>
    %22 = vector.broadcast %21 : vector<1x128xi32> to vector<80x128xi32>
    %23 = arith.cmpi eq, %1, %22 : vector<80x128xi32>
    %24 = arith.ori %18, %23 : vector<80x128xi1>
    %25 = arith.extui %24 : vector<80x128xi1> to vector<80x128xi32>
    %26 = arith.sitofp %25 : vector<80x128xi32> to vector<80x128xf32>
    %c0_1 = arith.constant 0 : index
    %c0_2 = arith.constant 0 : index
    %27 = vector.load %arg2[%c0_1, %c0_2] : memref<16x80xf32, #tpu.memory_space<vmem>>, vector<16x80xf32>
    %cst = arith.constant dense<0.000000e+00> : vector<16x128xf32>
    %28 = tpu.matmul %27, %26, %cst {dimension_numbers = #tpu.dot_dimension_numbers<[1], [0], [0], [1], [0, 0, 1, 1], [], []>} : vector<16x80xf32>, vector<80x128xf32>, vector<16x128xf32> -> vector<16x128xf32>
    %c0_3 = arith.constant 0 : index
    %c0_4 = arith.constant 0 : index
    %29 = vector.load %arg3[%c0_3, %c0_4] : memref<16x1xf32, #tpu.memory_space<vmem>>, vector<16x1xf32>
    %30 = vector.broadcast %29 : vector<16x1xf32> to vector<16x128xf32>
    %31 = arith.addf %28, %30 : vector<16x128xf32>
    %32 = arith.truncf %31 : vector<16x128xf32> to vector<16x128xbf16>
    %c0_5 = arith.constant 0 : index
    %c0_6 = arith.constant 0 : index
    %33 = vector.load %arg4[%c0_5, %c0_6] : memref<16x128xbf16, #tpu.memory_space<vmem>>, vector<16x128xbf16>
    tpu.vector_store %arg4[%c0_5, %c0_6], %32 {strides = array<i32>} : memref<16x128xbf16, #tpu.memory_space<vmem>>, vector<16x128xbf16>,
    return
  }
  func.func @transform_0(%arg0: i32) -> (i32, i32) {
    %c0_i32 = arith.constant 0 : i32
    %c0_i32_0 = arith.constant 0 : i32
    return %c0_i32, %arg0 : i32, i32
  }
  func.func @transform_1(%arg0: i32) -> (i32, i32) {
    %c0_i32 = arith.constant 0 : i32
    %c0_i32_0 = arith.constant 0 : i32
    %c0_i32_1 = arith.constant 0 : i32
    return %c0_i32, %c0_i32_0 : i32, i32
  }
  func.func @transform_2(%arg0: i32) -> (i32, i32) {
    %c0_i32 = arith.constant 0 : i32
    %c0_i32_0 = arith.constant 0 : i32
    %c0_i32_1 = arith.constant 0 : i32
    return %c0_i32, %c0_i32_0 : i32, i32
  }
  func.func @transform_3(%arg0: i32) -> (i32, i32) {
    %c0_i32 = arith.constant 0 : i32
    %c0_i32_0 = arith.constant 0 : i32
    return %c0_i32, %arg0 : i32, i32
  }
}

</mosaic_0001>

<bundles_post_ra>
// kernel: tpu_custom_call.1
= control target key start
LH: loop header
LB: loop body
LE: loop exit
PB: predicated region body
PF: predicated region fallthrough
CT: control target
= control target key end

     0   :  { %8 = vsyncpa [#allocation3], 0  ;;  %s428_s0 = inlined_call_operand.hbm [shape: s32[4,128], index: 0, kind: input, shape index: {}]   ;;  %s429_s1 = inlined_call_operand.vmem [shape: f32[16,80], index: 1, kind: input, shape index: {}]   ;;  %s430_s2 = inlined_call_operand.vmem [shape: f32[16,1], index: 2, kind: input, shape index: {}]   ;;  %s431_s3 = inlined_call_operand.hbm [shape: bf16[16,128], index: 3, kind: output, shape index: {}]  }
   0x1   :  { %9 = vsyncpa [#allocation4], 0  ;;  %s15_s14 = sshll.u32 %s428_s0, 4  ;;  %s301_s15 = smov [#allocation2]   ;;  %s16_s14 = int_to_ptr.hbm [resolvable:$true] %s15_s14 }
   0x2   :  { %s17_s16 = sshll.u32 %s301_s15, 4  ;;  %s18_s16 = int_to_ptr.vmem [resolvable:$true] %s17_s16 }
   0x3   :  { %20 = dma.hbm_to_vmem [thread:$0]  %s16_s14, 64, %s18_s16, [#allocation3]  }
   0x4   :  { %297 = dma.done.wait [#allocation3], 64  }
   0x5   :  { %298 = vsyncadd [#allocation3], 4294967232  ;;  %v30_v0 = vlaneseq  ;;  %v302_v2 = vmov 0   ;;  %v29_v4 = vld [vmem:[#allocation2] sm:$0xf]  ;;  %v141_v15 = vld [vmem:[%s430_s2 + $0x8] sm:$0xff] }
   0x6   :  { %248 = vset.pattern.permute.xlu0 %v302_v2  ;;  %v140_v5 = vld [vmem:[%s430_s2] sm:$0xff]  ;;  %v336_v6 = vperm.slane %v29_v4, 0  ;;  %v52_v7 = vadd.s32 32, %v29_v4  ;;  %v74_v8 = vadd.s32 40, %v29_v4  ;;  %v96_v9 = vadd.s32 72, %v29_v4  ;;  %v139_v24 = vld [vmem:[%s429_s1 + $0x8] sm:$0xff] }
   0x7   :  { %v330_v1 = vshrl.u32 %v30_v0, 7  ;;  %144 = vperm.xlu0 %248, %v140_v5   ;;  %v303_v17 = vmov 1.0   ;;  %v138_v23 = vld [vmem:[%s429_s1] sm:$0xff]  ;;  %s304_s23 = smov [#allocation5]   ;;  %s192_s27 = sshll.u32 %s431_s3, 4  ;;  %s193_s27 = int_to_ptr.hbm [resolvable:$true] %s192_s27 }
   0x8   :  { %v340_v11 = vperm.slane %v52_v7, 1  ;;  %v342_v12 = vperm.slane %v74_v8, 2  ;;  %v344_v13 = vperm.slane %v96_v9, 3  ;;  %s190_s24 = sshll.u32 %s304_s23, 4  ;;  %s305_s1 = smov 64   ;;  %s191_s24 = int_to_ptr.vmem [resolvable:$true] %s190_s24 }
   0x9   :  { %v40_v3 = vadd.s32 72, %v330_v1  ;;  %v39_v10 = vadd.s32 64, %v330_v1  ;;  %v38_v14 = vadd.s32 56, %v330_v1  ;;  %v37_v16 = vadd.s32 48, %v330_v1  ;;  %s306_s28 = smov 4  }
   0xa   :  { %v36_v18 = vadd.s32 40, %v330_v1  ;;  %v35_v19 = vadd.s32 32, %v330_v1  ;;  %v34_v20 = vadd.s32 24, %v330_v1  ;;  %v33_v21 = vadd.s32 16, %v330_v1 }
   0xb   :  { %vm51_vm0 = vcmp.eq.s32.totalorder %v40_v3, %v336_v6  ;;  %vm63_vm1 = vcmp.eq.s32.totalorder %v40_v3, %v340_v11  ;;  %vm85_vm2 = vcmp.eq.s32.totalorder %v40_v3, %v342_v12  ;;  %vm107_vm3 = vcmp.eq.s32.totalorder %v40_v3, %v344_v13 }
   0xc   :  { %vm73_vm4 = vmor %vm51_vm0, %vm63_vm1  ;;  %vm50_vm5 = vcmp.eq.s32.totalorder %v39_v10, %v336_v6  ;;  %vm62_vm6 = vcmp.eq.s32.totalorder %v39_v10, %v340_v11  ;;  %vm84_vm8 = vcmp.eq.s32.totalorder %v39_v10, %v342_v12  ;;  %vm106_vm10 = vcmp.eq.s32.totalorder %v39_v10, %v344_v13 }
   0xd   :  { %vm95_vm7 = vmor %vm73_vm4, %vm85_vm2  ;;  %vm49_vm12 = vcmp.eq.s32.totalorder %v38_v14, %v336_v6  ;;  %vm61_vm13 = vcmp.eq.s32.totalorder %v38_v14, %v340_v11  ;;  %vm83_vm15 = vcmp.eq.s32.totalorder %v38_v14, %v342_v12  ;;  %vm105_vm1 = vcmp.eq.s32.totalorder %v38_v14, %v344_v13 }
   0xe   :  { %vm117_vm9 = vmor %vm95_vm7, %vm107_vm3  ;;  %vm48_vm3 = vcmp.eq.s32.totalorder %v37_v16, %v336_v6  ;;  %vm60_vm4 = vcmp.eq.s32.totalorder %v37_v16, %v340_v11  ;;  %v32_v22 = vadd.s32 8, %v330_v1 }
   0xf   :  { %215 = vmatpush.msk.msra.mxu0 %vm117_vm9, %v303_v17  ;;  %232 = vmatpush.msk.msra.mxu1 %vm117_vm9, %v303_v17  ;;  %vm72_vm11 = vmor %vm50_vm5, %vm62_vm6  ;;  %vm82_vm6 = vcmp.eq.s32.totalorder %v37_v16, %v342_v12 }
  0x10   :  { %vm94_vm14 = vmor %vm72_vm11, %vm84_vm8  ;;  %149 = vperm.xlu0 %248, %v141_v15   ;;  %vm104_vm8 = vcmp.eq.s32.totalorder %v37_v16, %v344_v13  ;;  %vm59_vm11 = vcmp.eq.s32.totalorder %v36_v18, %v340_v11 }
  0x11   :  { %vm116_vm0 = vmor %vm94_vm14, %vm106_vm10  ;;  %vm47_vm10 = vcmp.eq.s32.totalorder %v36_v18, %v336_v6 }
  0x12   :  { %216 = vmatpush.msk.msra.mxu0 %vm116_vm0, %v303_v17  ;;  %233 = vmatpush.msk.msra.mxu1 %vm116_vm0, %v303_v17  ;;  %vm71_vm2 = vmor %vm49_vm12, %vm61_vm13  ;;  %vm81_vm13 = vcmp.eq.s32.totalorder %v36_v18, %v342_v12 }
  0x13   :  { %vm93_vm5 = vmor %vm71_vm2, %vm83_vm15  ;;  %vm103_vm15 = vcmp.eq.s32.totalorder %v36_v18, %v344_v13  ;;  %vm58_vm2 = vcmp.eq.s32.totalorder %v35_v19, %v340_v11 }
  0x14   :  { %vm115_vm7 = vmor %vm93_vm5, %vm105_vm1  ;;  %vm46_vm1 = vcmp.eq.s32.totalorder %v35_v19, %v336_v6 }
  0x15   :  { %217 = vmatpush.msk.msra.mxu0 %vm115_vm7, %v303_v17  ;;  %234 = vmatpush.msk.msra.mxu1 %vm115_vm7, %v303_v17  ;;  %vm70_vm9 = vmor %vm48_vm3, %vm60_vm4  ;;  %vm80_vm4 = vcmp.eq.s32.totalorder %v35_v19, %v342_v12 }
  0x16   :  { %vm92_vm12 = vmor %vm70_vm9, %vm82_vm6  ;;  %vm102_vm6 = vcmp.eq.s32.totalorder %v35_v19, %v344_v13  ;;  %vm57_vm9 = vcmp.eq.s32.totalorder %v34_v20, %v340_v11 }
  0x17   :  { %vm114_vm14 = vmor %vm92_vm12, %vm104_vm8  ;;  %vm45_vm8 = vcmp.eq.s32.totalorder %v34_v20, %v336_v6 }
  0x18   :  { %218 = vmatpush.msk.msra.mxu0 %vm114_vm14, %v303_v17  ;;  %235 = vmatpush.msk.msra.mxu1 %vm114_vm14, %v303_v17  ;;  %vm69_vm0 = vmor %vm47_vm10, %vm59_vm11  ;;  %vm79_vm11 = vcmp.eq.s32.totalorder %v34_v20, %v342_v12 }
  0x19   :  { %vm91_vm3 = vmor %vm69_vm0, %vm81_vm13  ;;  %vm101_vm13 = vcmp.eq.s32.totalorder %v34_v20, %v344_v13  ;;  %vm56_vm0 = vcmp.eq.s32.totalorder %v33_v21, %v340_v11 }
  0x1a   :  { %vm113_vm5 = vmor %vm91_vm3, %vm103_vm15  ;;  %vm44_vm15 = vcmp.eq.s32.totalorder %v33_v21, %v336_v6 }
  0x1b   :  { %219 = vmatpush.msk.msra.mxu0 %vm113_vm5, %v303_v17  ;;  %236 = vmatpush.msk.msra.mxu1 %vm113_vm5, %v303_v17  ;;  %vm68_vm7 = vmor %vm46_vm1, %vm58_vm2  ;;  %vm78_vm2 = vcmp.eq.s32.totalorder %v33_v21, %v342_v12 }
  0x1c   :  { %vm90_vm10 = vmor %vm68_vm7, %vm80_vm4  ;;  %vm100_vm4 = vcmp.eq.s32.totalorder %v33_v21, %v344_v13  ;;  %vm55_vm7 = vcmp.eq.s32.totalorder %v32_v22, %v340_v11 }
  0x1d   :  { %vm112_vm12 = vmor %vm90_vm10, %vm102_vm6  ;;  %vm43_vm6 = vcmp.eq.s32.totalorder %v32_v22, %v336_v6 }
  0x1e   :  { %220 = vmatpush.msk.msra.mxu0 %vm112_vm12, %v303_v17  ;;  %237 = vmatpush.msk.msra.mxu1 %vm112_vm12, %v303_v17  ;;  %vm67_vm14 = vmor %vm45_vm8, %vm57_vm9  ;;  %vm77_vm9 = vcmp.eq.s32.totalorder %v32_v22, %v342_v12 }
  0x1f   :  { %vm89_vm1 = vmor %vm67_vm14, %vm79_vm11  ;;  %vm99_vm11 = vcmp.eq.s32.totalorder %v32_v22, %v344_v13  ;;  %vm54_vm14 = vcmp.eq.s32.totalorder %v330_v1, %v340_v11 }
  0x20   :  { %vm111_vm3 = vmor %vm89_vm1, %vm101_vm13  ;;  %vm42_vm13 = vcmp.eq.s32.totalorder %v330_v1, %v336_v6 }
  0x21   :  { %221 = vmatpush.msk.msra.mxu0 %vm111_vm3, %v303_v17  ;;  %238 = vmatpush.msk.msra.mxu1 %vm111_vm3, %v303_v17  ;;  %vm66_vm5 = vmor %vm44_vm15, %vm56_vm0  ;;  %vm76_vm0 = vcmp.eq.s32.totalorder %v330_v1, %v342_v12 }
  0x22   :  { %vm88_vm8 = vmor %vm66_vm5, %vm78_vm2  ;;  %vm98_vm2 = vcmp.eq.s32.totalorder %v330_v1, %v344_v13  ;;  %vm152_vm5 = vcmask 654336  }
  0x23   :  { %vm110_vm10 = vmor %vm88_vm8, %vm100_vm4 }
  0x24   :  { %222 = vmatpush.msk.msra.mxu0 %vm110_vm10, %v303_v17  ;;  %239 = vmatpush.msk.msra.mxu1 %vm110_vm10, %v303_v17  ;;  %vm65_vm12 = vmor %vm43_vm6, %vm55_vm7 }
  0x25   :  { %vm87_vm15 = vmor %vm65_vm12, %vm77_vm9 }
  0x26   :  { %vm109_vm1 = vmor %vm87_vm15, %vm99_vm11 }
  0x27   :  { %223 = vmatpush.msk.msra.mxu0 %vm109_vm1, %v303_v17  ;;  %240 = vmatpush.msk.msra.mxu1 %vm109_vm1, %v303_v17  ;;  %vm64_vm3 = vmor %vm42_vm13, %vm54_vm14 }
  0x28   :  { %vm86_vm4 = vmor %vm64_vm3, %vm76_vm0 }
  0x29   :  { %vm108_vm6 = vmor %vm86_vm4, %vm98_vm2 }
  0x2a   :  { %224 = vmatpush.msk.msra.mxu0 %vm108_vm6, %v303_v17  ;;  %241 = vmatpush.msk.msra.mxu1 %vm108_vm6, %v303_v17 }
  0x2b   :  { %225 = vmatmul.msk.f32.vlgmr.msra.gmra.mxu0 %vm152_vm5, %v138_v23  ;;  %226 = vmatmul.msk.f32.vlgmr.msra.gmra.mxu1 %vm152_vm5, %v139_v24 }
  0x79   :  { %v145_v25 = vpop.permute.xlu0 %144 }
  0x82   :  { %v150_v26 = vpop.permute.xlu0 %149 }
  0xa8   :  { %v176_v27 = vpop.f32.mrf.mxu0  ;;  %v179_v28 = vpop.f32.mrf.mxu1 }
  0xa9   :  { %v177_v29 = vadd.f32 %v176_v27, %v145_v25  ;;  %v180_v30 = vadd.f32 %v179_v28, %v150_v26 }
  0xab   :  { %v230_v31 = vpack.c.bf16 %v180_v30, %v177_v29 }
  0xad   :  { %231 = vst [vmem:[#allocation5] sm:$0xff] %v230_v31  }
  0xae   :  { %198 = dma.vmem_to_hbm [thread:$0]  %s191_s24, 128, %s193_s27, [#allocation4], %s305_s1, %s305_s1, %s306_s28  }
  0xaf   :  { %299 = dma.done.wait [#allocation4], 128  }
  0xb0   :  { %300 = vsyncadd [#allocation4], 4294967168 }
  0xb1   :  { %203 = vsyncpa [#allocation3], 1 }
  0xb2   :  { %204 = vsyncpa [#allocation4], 1 }

</bundles_post_ra>
